<compile_context>
chip_gen: v7x
topology: tpu7x:2x2x1
jax: 0.10.0
libtpu: 0.0.40
codegen_flags: <defaults>
</compile_context>

<pallas_src>
import functools

import jax
import jax.numpy as jnp
from jax.experimental import pallas as pl
from jax.experimental.pallas import tpu as pltpu


def _round_up(x, m):
    return ((x + m - 1) // m) * m


def _fused_embeddings_kernel(x_ref, *refs, cfg, tile_l, halo):
    """Fused init_embed -> causal conv blocks -> dyn_embed for one (b, L-tile).

    x_ref : (1, halo + L_round, features) causally pre-padded input, resident
            per batch element (constant index over the L-tile grid axis).
    refs  : (w_0, b_0, ..., w_{n-1}, b_{n-1}, o_ref) with
            w_l : (K_l*Cin_l, Cout_l) packed taps (rows k*Cin..(k+1)*Cin = tap k)
            b_l : (1, Cout_l) float32
    o_ref : (1, tile_l, d_model)
    cfg   : static tuple of (K, dilation, apply_relu) per layer.
    """
    n_layers = len(cfg)
    o_ref = refs[2 * n_layers]
    t = pl.program_id(1)
    start = pl.multiple_of(t * tile_l, 8)      # tile_l is a multiple of 8

    # Window = this tile plus its total causal halo (receptive field).
    win = tile_l + halo
    cur = x_ref[0, pl.ds(start, win), :]       # (win, features)

    consumed = 0
    for l, (K, dil, relu) in enumerate(cfg):
        w = refs[2 * l][...]                   # (K*Cin, Cout), VMEM-resident
        b = refs[2 * l + 1][...]               # (1, Cout), float32
        cin = w.shape[0] // K
        w_out = win - (K - 1) * dil
        # Causal dilated conv as K shifted-tap matmuls, accumulated in f32.
        acc = jnp.dot(cur[0:w_out, :], w[0:cin, :],
                      preferred_element_type=jnp.float32)
        for k in range(1, K):
            acc = acc + jnp.dot(cur[k * dil:k * dil + w_out, :],
                                w[k * cin:(k + 1) * cin, :],
                                preferred_element_type=jnp.float32)
        acc = acc + b                          # f32 epilogue (bias + ReLU)
        if relu:
            acc = jnp.maximum(acc, 0.0)
        consumed += (K - 1) * dil
        win = w_out
        # Re-impose per-layer causal zero padding: window rows whose original
        # sequence position is < 0 must be zero before they feed any later
        # dilated conv (their value here would otherwise be bias/ReLU(bias)).
        if halo - consumed > 0:
            thresh = (halo - consumed) - t * tile_l
            rows = jax.lax.broadcasted_iota(jnp.int32, (w_out, 1), 0)
            acc = jnp.where(rows >= thresh, acc, 0.0)
        cur = acc.astype(x_ref.dtype)

    o_ref[0] = cur.astype(o_ref.dtype)         # (tile_l, d_model)


def embeddings_forward(params, x_ncl, *, tile_l=1024, compute_dtype=jnp.float32):
    """x_ncl: (B, features, L) as in PyTorch Conv1d.  Returns (B, L, d_model)."""
    weights = params["weights"]                # [(w_packed, bias_row), ...]
    cfg = params["cfg"]                        # static ((K, dil, relu), ...)
    halo = sum((k - 1) * d for (k, d, _) in cfg)

    B, _, L = x_ncl.shape
    d_model = weights[-1][0].shape[1]

    # Channels-last once + single causal left pad (+ right pad so L splits into
    # 8-aligned tiles).  This replaces the per-layer pad copies of the old code
    # and touches only the smallest tensor.
    tile_l = max(8, _round_up(min(tile_l, _round_up(L, 8)), 8))
    l_round = _round_up(L, tile_l)
    n_t = l_round // tile_l
    x = jnp.transpose(x_ncl, (0, 2, 1)).astype(compute_dtype)
    x = jnp.pad(x, ((0, 0), (halo, l_round - L), (0, 0)))
    l_pad, features = x.shape[1], x.shape[2]

    in_specs = [pl.BlockSpec((1, l_pad, features), lambda b, t: (b, 0, 0))]
    args = [x]
    for w, bias in weights:
        in_specs.append(pl.BlockSpec(w.shape, lambda b, t: (0, 0)))
        args.append(w.astype(compute_dtype))
        in_specs.append(pl.BlockSpec(bias.shape, lambda b, t: (0, 0)))
        args.append(bias.astype(jnp.float32))  # keep the epilogue in f32

    kernel = functools.partial(_fused_embeddings_kernel, cfg=cfg,
                               tile_l=tile_l, halo=halo)
    out = pl.pallas_call(
        kernel,
        out_shape=jax.ShapeDtypeStruct((B, l_round, d_model), compute_dtype),
        grid_spec=pltpu.PrefetchScalarGridSpec(
            num_scalar_prefetch=0,
            grid=(B, n_t),
            in_specs=in_specs,
            out_specs=pl.BlockSpec((1, tile_l, d_model), lambda b, t: (b, t, 0)),
        ),
        compiler_params=pltpu.CompilerParams(
            dimension_semantics=("parallel", "parallel")),
    )(*args)
    if l_round != L:
        out = out[:, :L, :]
    # PyTorch returns dyn_embed(x).transpose(-2, -1) == (B, L, d_model);
    # the channels-last result already has that layout.
    return out


def _conv_params(key, cout, cin, k):
    """Deterministic Conv1d parameter init (PyTorch-like uniform scale)."""
    kw, kb = jax.random.split(key)
    bound = float((cin * k) ** -0.5)
    w = jax.random.uniform(kw, (cout, cin, k), jnp.float32, -bound, bound)
    b = jax.random.uniform(kb, (cout,), jnp.float32, -bound, bound)
    return w, b


def _pack_conv(w_oik, b_o):
    """(Cout, Cin, K) -> (K*Cin, Cout) tap-stacked matmul operand; bias -> (1, Cout)."""
    cout, cin, k = w_oik.shape
    w_packed = jnp.transpose(w_oik, (2, 1, 0)).reshape(k * cin, cout)
    return w_packed, b_o.reshape(1, cout)


def init_embeddings_params(key, d_model, features, conv_dil_list, conv_kern_list,
                           embed_ds):
    n_blocks = len(conv_dil_list)
    keys = jax.random.split(key, 2 + n_blocks)
    raw = [(_conv_params(keys[0], embed_ds[0], features, 1), 1, False)]
    for i in range(n_blocks):
        # TODO(synk): `CausalBlock` is not defined in the provided snippet; it
        # is modeled as a causal dilated Conv1d + ReLU, dropout = identity
        # (eval-mode forward).
        raw.append((_conv_params(keys[1 + i], embed_ds[i + 1], embed_ds[i],
                                 conv_kern_list[i]), conv_dil_list[i], True))
    raw.append((_conv_params(keys[1 + n_blocks], d_model, embed_ds[-1], 1),
                1, False))

    weights, cfg = [], []
    for (w, b), dil, relu in raw:
        weights.append(_pack_conv(w, b))
        cfg.append((int(w.shape[2]), int(dil), bool(relu)))
    return {"weights": weights, "cfg": tuple(cfg)}


def _reference_forward(params, x_ncl):
    """Pure-JAX per-layer reference (each conv's input zero-padded causally)."""
    x = jnp.transpose(x_ncl, (0, 2, 1)).astype(jnp.float32)
    for (w, b), (K, dil, relu) in zip(params["weights"], params["cfg"]):
        B, L, cin = x.shape
        pad = (K - 1) * dil
        xp = jnp.pad(x, ((0, 0), (pad, 0), (0, 0)))
        acc = jnp.zeros((B, L, w.shape[1]), jnp.float32) + b
        for k in range(K):
            wk = w[k * cin:(k + 1) * cin, :]
            acc = acc + jnp.einsum("blc,cd->bld",
                                   xp[:, k * dil:k * dil + L, :], wk,
                                   precision=jax.lax.Precision.HIGHEST)
        x = jnp.maximum(acc, 0.0) if relu else acc
    return x


if __name__ == "__main__":
    # Small, forward-consistent shapes.
    B, features, L = 2, 4, 16
    d_model = 32
    embed_ds = [8, 16, 16]
    conv_kern_list = [3, 3]
    conv_dil_list = [1, 2]
    dropout = 0.1  # identity at inference

    key = jax.random.PRNGKey(0)
    k_params, k_x = jax.random.split(key)
    params = init_embeddings_params(k_params, d_model, features,
                                    conv_dil_list, conv_kern_list, embed_ds)
    x = jax.random.normal(k_x, (B, features, L), jnp.float32)

    out = embeddings_forward(params, x)
    out = jax.block_until_ready(out)
    assert out.shape == (B, L, d_model), out.shape

    ref = jax.block_until_ready(_reference_forward(params, x))
    assert bool(jnp.allclose(out, ref, rtol=2e-3, atol=2e-3)), (
        float(jnp.max(jnp.abs(out - ref))))

    print("KERNEL_OK")
</pallas_src>

<mosaic_0001>
module attributes {stable_mosaic.version = 11 : i64} {
  func.func @_fused_embeddings_kernel(%arg0: i32, %arg1: i32, %arg2: memref<1x22x4xf32, #tpu.memory_space<vmem>>, %arg3: memref<4x8xf32, #tpu.memory_space<vmem>>, %arg4: memref<1x8xf32, #tpu.memory_space<vmem>>, %arg5: memref<24x16xf32, #tpu.memory_space<vmem>>, %arg6: memref<1x16xf32, #tpu.memory_space<vmem>>, %arg7: memref<48x16xf32, #tpu.memory_space<vmem>>, %arg8: memref<1x16xf32, #tpu.memory_space<vmem>>, %arg9: memref<16x32xf32, #tpu.memory_space<vmem>>, %arg10: memref<1x32xf32, #tpu.memory_space<vmem>>, %arg11: memref<1x16x32xf32, #tpu.memory_space<vmem>>) attributes {dimension_semantics = [#tpu.dimension_semantics<parallel>, #tpu.dimension_semantics<parallel>], iteration_bounds = array<i64: 2, 1>, scalar_prefetch = 0 : i64, scratch_operands = 0 : i64, tpu.core_type = #tpu.core_type<tc>, window_params = [{transform_indices = @transform_0, window_bounds = array<i64: 1, 22, 4>}, {pipeline_mode = #tpu.pipeline_mode<synchronous>, transform_indices = @transform_1, window_bounds = array<i64: 4, 8>}, {pipeline_mode = #tpu.pipeline_mode<synchronous>, transform_indices = @transform_2, window_bounds = array<i64: 1, 8>}, {pipeline_mode = #tpu.pipeline_mode<synchronous>, transform_indices = @transform_3, window_bounds = array<i64: 24, 16>}, {pipeline_mode = #tpu.pipeline_mode<synchronous>, transform_indices = @transform_4, window_bounds = array<i64: 1, 16>}, {pipeline_mode = #tpu.pipeline_mode<synchronous>, transform_indices = @transform_5, window_bounds = array<i64: 48, 16>}, {pipeline_mode = #tpu.pipeline_mode<synchronous>, transform_indices = @transform_6, window_bounds = array<i64: 1, 16>}, {pipeline_mode = #tpu.pipeline_mode<synchronous>, transform_indices = @transform_7, window_bounds = array<i64: 16, 32>}, {pipeline_mode = #tpu.pipeline_mode<synchronous>, transform_indices = @transform_8, window_bounds = array<i64: 1, 32>}, {transform_indices = @transform_9, window_bounds = array<i64: 1, 16, 32>}]} {
    %c16_i32 = arith.constant 16 : i32
    %0 = arith.muli %arg1, %c16_i32 : i32
    %1 = tpu.assume_multiple %0, 8 : i32
    %c0 = arith.constant 0 : index
    %2 = arith.index_cast %1 : i32 to index
    %c0_0 = arith.constant 0 : index
    %3 = vector.load %arg2[%c0, %2, %c0_0] : memref<1x22x4xf32, #tpu.memory_space<vmem>>, vector<1x22x4xf32>
    %4 = vector.shape_cast %3 : vector<1x22x4xf32> to vector<22x4xf32>
    %c0_1 = arith.constant 0 : index
    %c0_2 = arith.constant 0 : index
    %5 = vector.load %arg3[%c0_1, %c0_2] : memref<4x8xf32, #tpu.memory_space<vmem>>, vector<4x8xf32>
    %c0_3 = arith.constant 0 : index
    %c0_4 = arith.constant 0 : index
    %6 = vector.load %arg4[%c0_3, %c0_4] : memref<1x8xf32, #tpu.memory_space<vmem>>, vector<1x8xf32>
    %cst = arith.constant dense<0.000000e+00> : vector<22x8xf32>
    %7 = tpu.matmul %4, %5, %cst {dimension_numbers = #tpu.dot_dimension_numbers<[1], [0], [0], [1], [0, 0, 1, 1], [], []>} : vector<22x4xf32>, vector<4x8xf32>, vector<22x8xf32> -> vector<22x8xf32>
    %8 = vector.broadcast %6 : vector<1x8xf32> to vector<22x8xf32>
    %9 = arith.addf %7, %8 : vector<22x8xf32>
    %c16_i32_5 = arith.constant 16 : i32
    %10 = arith.muli %arg1, %c16_i32_5 : i32
    %c6_i32 = arith.constant 6 : i32
    %11 = arith.subi %c6_i32, %10 : i32
    %12 = tpu.iota {dimensions = array<i32: 0>} : vector<22x1xi32>
    %13 = vector.broadcast %11 : i32 to vector<22x1xi32>
    %14 = arith.cmpi sge, %12, %13 : vector<22x1xi32>
    %cst_6 = arith.constant 0.000000e+00 : f32
    %15 = vector.shape_cast %14 : vector<22x1xi1> to vector<22x1xi1>
    %16 = vector.broadcast %15 : vector<22x1xi1> to vector<22x8xi1>
    %17 = vector.broadcast %cst_6 : f32 to vector<22x8xf32>
    %18 = arith.select %16, %9, %17 : vector<22x8xi1>, vector<22x8xf32>
    %c0_7 = arith.constant 0 : index
    %c0_8 = arith.constant 0 : index
    %19 = vector.load %arg5[%c0_7, %c0_8] : memref<24x16xf32, #tpu.memory_space<vmem>>, vector<24x16xf32>
    %c0_9 = arith.constant 0 : index
    %c0_10 = arith.constant 0 : index
    %20 = vector.load %arg6[%c0_9, %c0_10] : memref<1x16xf32, #tpu.memory_space<vmem>>, vector<1x16xf32>
    %21 = vector.extract_strided_slice %18 {offsets = [0, 0], sizes = [20, 8], strides = [1, 1]} : vector<22x8xf32> to vector<20x8xf32>
    %22 = vector.extract_strided_slice %19 {offsets = [0, 0], sizes = [8, 16], strides = [1, 1]} : vector<24x16xf32> to vector<8x16xf32>
    %cst_11 = arith.constant dense<0.000000e+00> : vector<20x16xf32>
    %23 = tpu.matmul %21, %22, %cst_11 {dimension_numbers = #tpu.dot_dimension_numbers<[1], [0], [0], [1], [0, 0, 1, 1], [], []>} : vector<20x8xf32>, vector<8x16xf32>, vector<20x16xf32> -> vector<20x16xf32>
    %24 = vector.extract_strided_slice %18 {offsets = [1, 0], sizes = [20, 8], strides = [1, 1]} : vector<22x8xf32> to vector<20x8xf32>
    %25 = vector.extract_strided_slice %19 {offsets = [8, 0], sizes = [8, 16], strides = [1, 1]} : vector<24x16xf32> to vector<8x16xf32>
    %cst_12 = arith.constant dense<0.000000e+00> : vector<20x16xf32>
    %26 = tpu.matmul %24, %25, %cst_12 {dimension_numbers = #tpu.dot_dimension_numbers<[1], [0], [0], [1], [0, 0, 1, 1], [], []>} : vector<20x8xf32>, vector<8x16xf32>, vector<20x16xf32> -> vector<20x16xf32>
    %27 = arith.addf %23, %26 : vector<20x16xf32>
    %28 = vector.extract_strided_slice %18 {offsets = [2, 0], sizes = [20, 8], strides = [1, 1]} : vector<22x8xf32> to vector<20x8xf32>
    %29 = vector.extract_strided_slice %19 {offsets = [16, 0], sizes = [8, 16], strides = [1, 1]} : vector<24x16xf32> to vector<8x16xf32>
    %cst_13 = arith.constant dense<0.000000e+00> : vector<20x16xf32>
    %30 = tpu.matmul %28, %29, %cst_13 {dimension_numbers = #tpu.dot_dimension_numbers<[1], [0], [0], [1], [0, 0, 1, 1], [], []>} : vector<20x8xf32>, vector<8x16xf32>, vector<20x16xf32> -> vector<20x16xf32>
    %31 = arith.addf %27, %30 : vector<20x16xf32>
    %32 = vector.broadcast %20 : vector<1x16xf32> to vector<20x16xf32>
    %33 = arith.addf %31, %32 : vector<20x16xf32>
    %cst_14 = arith.constant 0.000000e+00 : f32
    %34 = vector.broadcast %cst_14 : f32 to vector<20x16xf32>
    %35 = arith.maximumf %33, %34 : vector<20x16xf32>
    %c16_i32_15 = arith.constant 16 : i32
    %36 = arith.muli %arg1, %c16_i32_15 : i32
    %c4_i32 = arith.constant 4 : i32
    %37 = arith.subi %c4_i32, %36 : i32
    %38 = tpu.iota {dimensions = array<i32: 0>} : vector<20x1xi32>
    %39 = vector.broadcast %37 : i32 to vector<20x1xi32>
    %40 = arith.cmpi sge, %38, %39 : vector<20x1xi32>
    %cst_16 = arith.constant 0.000000e+00 : f32
    %41 = vector.shape_cast %40 : vector<20x1xi1> to vector<20x1xi1>
    %42 = vector.broadcast %41 : vector<20x1xi1> to vector<20x16xi1>
    %43 = vector.broadcast %cst_16 : f32 to vector<20x16xf32>
    %44 = arith.select %42, %35, %43 : vector<20x16xi1>, vector<20x16xf32>
    %c0_17 = arith.constant 0 : index
    %c0_18 = arith.constant 0 : index
    %45 = vector.load %arg7[%c0_17, %c0_18] : memref<48x16xf32, #tpu.memory_space<vmem>>, vector<48x16xf32>
    %c0_19 = arith.constant 0 : index
    %c0_20 = arith.constant 0 : index
    %46 = vector.load %arg8[%c0_19, %c0_20] : memref<1x16xf32, #tpu.memory_space<vmem>>, vector<1x16xf32>
    %47 = vector.extract_strided_slice %44 {offsets = [0, 0], sizes = [16, 16], strides = [1, 1]} : vector<20x16xf32> to vector<16x16xf32>
    %48 = vector.extract_strided_slice %45 {offsets = [0, 0], sizes = [16, 16], strides = [1, 1]} : vector<48x16xf32> to vector<16x16xf32>
    %cst_21 = arith.constant dense<0.000000e+00> : vector<16x16xf32>
    %49 = tpu.matmul %47, %48, %cst_21 {dimension_numbers = #tpu.dot_dimension_numbers<[1], [0], [0], [1], [0, 0, 1, 1], [], []>} : vector<16x16xf32>, vector<16x16xf32>, vector<16x16xf32> -> vector<16x16xf32>
    %50 = vector.extract_strided_slice %44 {offsets = [2, 0], sizes = [16, 16], strides = [1, 1]} : vector<20x16xf32> to vector<16x16xf32>
    %51 = vector.extract_strided_slice %45 {offsets = [16, 0], sizes = [16, 16], strides = [1, 1]} : vector<48x16xf32> to vector<16x16xf32>
    %cst_22 = arith.constant dense<0.000000e+00> : vector<16x16xf32>
    %52 = tpu.matmul %50, %51, %cst_22 {dimension_numbers = #tpu.dot_dimension_numbers<[1], [0], [0], [1], [0, 0, 1, 1], [], []>} : vector<16x16xf32>, vector<16x16xf32>, vector<16x16xf32> -> vector<16x16xf32>
    %53 = arith.addf %49, %52 : vector<16x16xf32>
    %54 = vector.extract_strided_slice %44 {offsets = [4, 0], sizes = [16, 16], strides = [1, 1]} : vector<20x16xf32> to vector<16x16xf32>
    %55 = vector.extract_strided_slice %45 {offsets = [32, 0], sizes = [16, 16], strides = [1, 1]} : vector<48x16xf32> to vector<16x16xf32>
    %cst_23 = arith.constant dense<0.000000e+00> : vector<16x16xf32>
    %56 = tpu.matmul %54, %55, %cst_23 {dimension_numbers = #tpu.dot_dimension_numbers<[1], [0], [0], [1], [0, 0, 1, 1], [], []>} : vector<16x16xf32>, vector<16x16xf32>, vector<16x16xf32> -> vector<16x16xf32>
    %57 = arith.addf %53, %56 : vector<16x16xf32>
    %58 = vector.broadcast %46 : vector<1x16xf32> to vector<16x16xf32>
    %59 = arith.addf %57, %58 : vector<16x16xf32>
    %cst_24 = arith.constant 0.000000e+00 : f32
    %60 = vector.broadcast %cst_24 : f32 to vector<16x16xf32>
    %61 = arith.maximumf %59, %60 : vector<16x16xf32>
    %c0_25 = arith.constant 0 : index
    %c0_26 = arith.constant 0 : index
    %62 = vector.load %arg9[%c0_25, %c0_26] : memref<16x32xf32, #tpu.memory_space<vmem>>, vector<16x32xf32>
    %c0_27 = arith.constant 0 : index
    %c0_28 = arith.constant 0 : index
    %63 = vector.load %arg10[%c0_27, %c0_28] : memref<1x32xf32, #tpu.memory_space<vmem>>, vector<1x32xf32>
    %cst_29 = arith.constant dense<0.000000e+00> : vector<16x32xf32>
    %64 = tpu.matmul %61, %62, %cst_29 {dimension_numbers = #tpu.dot_dimension_numbers<[1], [0], [0], [1], [0, 0, 1, 1], [], []>} : vector<16x16xf32>, vector<16x32xf32>, vector<16x32xf32> -> vector<16x32xf32>
    %65 = vector.broadcast %63 : vector<1x32xf32> to vector<16x32xf32>
    %66 = arith.addf %64, %65 : vector<16x32xf32>
    %c0_30 = arith.constant 0 : index
    %c0_31 = arith.constant 0 : index
    %c0_32 = arith.constant 0 : index
    %67 = vector.load %arg11[%c0_30, %c0_31, %c0_32] : memref<1x16x32xf32, #tpu.memory_space<vmem>>, vector<1x16x32xf32>
    %68 = vector.shape_cast %67 : vector<1x16x32xf32> to vector<16x32xf32>
    %69 = vector.shape_cast %66 : vector<16x32xf32> to vector<1x16x32xf32>
    tpu.vector_store %arg11[%c0_30, %c0_31, %c0_32], %69 {strides = array<i32>} : memref<1x16x32xf32, #tpu.memory_space<vmem>>, vector<1x16x32xf32>,
    return
  }
  func.func @transform_0(%arg0: i32, %arg1: i32) -> (i32, i32, i32) {
    %c0_i32 = arith.constant 0 : i32
    %c0_i32_0 = arith.constant 0 : i32
    %c0_i32_1 = arith.constant 0 : i32
    return %arg0, %c0_i32, %c0_i32_0 : i32, i32, i32
  }
  func.func @transform_1(%arg0: i32, %arg1: i32) -> (i32, i32) {
    %c0_i32 = arith.constant 0 : i32
    %c0_i32_0 = arith.constant 0 : i32
    %c0_i32_1 = arith.constant 0 : i32
    return %c0_i32, %c0_i32_0 : i32, i32
  }
  func.func @transform_2(%arg0: i32, %arg1: i32) -> (i32, i32) {
    %c0_i32 = arith.constant 0 : i32
    %c0_i32_0 = arith.constant 0 : i32
    %c0_i32_1 = arith.constant 0 : i32
    return %c0_i32, %c0_i32_0 : i32, i32
  }
  func.func @transform_3(%arg0: i32, %arg1: i32) -> (i32, i32) {
    %c0_i32 = arith.constant 0 : i32
    %c0_i32_0 = arith.constant 0 : i32
    %c0_i32_1 = arith.constant 0 : i32
    return %c0_i32, %c0_i32_0 : i32, i32
  }
  func.func @transform_4(%arg0: i32, %arg1: i32) -> (i32, i32) {
    %c0_i32 = arith.constant 0 : i32
    %c0_i32_0 = arith.constant 0 : i32
    %c0_i32_1 = arith.constant 0 : i32
    return %c0_i32, %c0_i32_0 : i32, i32
  }
  func.func @transform_5(%arg0: i32, %arg1: i32) -> (i32, i32) {
    %c0_i32 = arith.constant 0 : i32
    %c0_i32_0 = arith.constant 0 : i32
    %c0_i32_1 = arith.constant 0 : i32
    return %c0_i32, %c0_i32_0 : i32, i32
  }
  func.func @transform_6(%arg0: i32, %arg1: i32) -> (i32, i32) {
    %c0_i32 = arith.constant 0 : i32
    %c0_i32_0 = arith.constant 0 : i32
    %c0_i32_1 = arith.constant 0 : i32
    return %c0_i32, %c0_i32_0 : i32, i32
  }
  func.func @transform_7(%arg0: i32, %arg1: i32) -> (i32, i32) {
    %c0_i32 = arith.constant 0 : i32
    %c0_i32_0 = arith.constant 0 : i32
    %c0_i32_1 = arith.constant 0 : i32
    return %c0_i32, %c0_i32_0 : i32, i32
  }
  func.func @transform_8(%arg0: i32, %arg1: i32) -> (i32, i32) {
    %c0_i32 = arith.constant 0 : i32
    %c0_i32_0 = arith.constant 0 : i32
    %c0_i32_1 = arith.constant 0 : i32
    return %c0_i32, %c0_i32_0 : i32, i32
  }
  func.func @transform_9(%arg0: i32, %arg1: i32) -> (i32, i32, i32) {
    %c0_i32 = arith.constant 0 : i32
    %c0_i32_0 = arith.constant 0 : i32
    return %arg0, %arg1, %c0_i32 : i32, i32, i32
  }
}

</mosaic_0001>

<bundles_post_ra>
// kernel: tpu_custom_call.1
= control target key start
LH: loop header
LB: loop body
LE: loop exit
PB: predicated region body
PF: predicated region fallthrough
CT: control target
= control target key end

     0   :  { %14 = vsyncpa [#allocation3], 0  ;;  %s1812_s0 = inlined_call_operand.vmem [shape: f32[2,22,4], index: 0, kind: input, shape index: {}]   ;;  %s1813_s1 = inlined_call_operand.vmem [shape: f32[4,8], index: 1, kind: input, shape index: {}]   ;;  %s1814_s2 = inlined_call_operand.vmem [shape: f32[1,8], index: 2, kind: input, shape index: {}]   ;;  %s1815_s3 = inlined_call_operand.vmem [shape: f32[24,16], index: 3, kind: input, shape index: {}]   ;;  %s1816_s4 = inlined_call_operand.vmem [shape: f32[1,16], index: 4, kind: input, shape index: {}]   ;;  %s1817_s5 = inlined_call_operand.vmem [shape: f32[48,16], index: 5, kind: input, shape index: {}]   ;;  %s1818_s6 = inlined_call_operand.vmem [shape: f32[1,16], index: 6, kind: input, shape index: {}]   ;;  %s1819_s7 = inlined_call_operand.vmem [shape: f32[16,32], index: 7, kind: input, shape index: {}]   ;;  %s1820_s8 = inlined_call_operand.vmem [shape: f32[1,32], index: 8, kind: input, shape index: {}]   ;;  %s1821_s9 = inlined_call_operand.hbm [shape: f32[2,16,32], index: 9, kind: output, shape index: {}]  }
   0x1   :  { %16 = vsyncpa [#allocation3 + $0x1], 0  ;;  %s1591_s30 = smov 0   ;;  %s1593_s10 = smov 0  }
   0x2   :  { %s1595_s11 = smov 0   ;;  %s1597_s12 = smov 0  }
   0x3   :  { %s1599_s13 = smov 0   ;;  %s1601_s14 = smov 0  }
   0x4 LB: > { %s1232_s15 = sadd.s32 4294967295, %s1534_s14   ;;  %s1233_s16 = sadd.s32 4294967294, %s1534_s14   ;;  %s1534_s14 = sphi %s1601_s14, %s22_s14   ;;  %s1530_s13 = sphi %s1599_s13, %s1828_s13   ;;  %s1526_s12 = sphi %s1597_s12, %s1827_s12   ;;  %s1522_s11 = sphi %s1595_s11, %s1826_s11   ;;  %s1518_s10 = sphi %s1593_s10, %s1825_s10   ;;  %s1514_s30 = sphi %s1591_s30, %s1824_s30  }
   0x5   : > { %s34_s17 = sadd.s32 1, %s1530_s13  ;;  %s237_s18 = sadd.s32 1, %s1522_s11 }
   0x6   : > { %p36_p0 = scmp.ge.s32.totalorder %s34_s17, 2  ;;  %p247_p1 = scmp.ne.s32.totalorder %s1522_s11, %s1518_s10 }
   0x7   : > { %p248_p2 = scmp.eq.s32.totalorder %s1232_s15, 1  ;;  %p253_p3 = scmp.ne.s32.totalorder %s1518_s10, %s1514_s30 }
   0x8   : > { %s1830_s17 = smov (%p36_p0, %s34_s17), 0  ;;  %p254_p5 = scmp.eq.s32.totalorder %s1233_s16, 1 }
   0x9   : > { %p1631_p4 = por %p248_p2, %p247_p1  ;;  %s232_s20 = ssub.s32 %s1530_s13, %s1830_s17 }
   0xa   : > { %p1236_p6 = scmp.ge.s32.totalorder %s1534_s14, 1  ;;  %p235_p7 = scmp.eq.s32.totalorder %s232_s20, 0 }
   0xb   : > { %p1638_p8 = por %p254_p5, %p253_p3  ;;  %p304_p9 = scmp.lt.s32.totalorder %s1534_s14, 3 }
   0xc   : > { %s1644_s22 = scalar_select %p235_p7, %s1522_s11, %s237_s18  }
   0xd   : > { %p305_p10 = pnand %p1236_p6, %p304_p9 }
   0xe   : > { %v351_v0 = vld [vmem:[%s1813_s1] sm:$0xf] (!%p305_p10)  ;;  %vm369_vm0 = vcmask (!%p305_p10), 1043456   ;;  %p340_p11 = scmp.lt.s32.totalorder (!%p305_p10), %s1526_s12, 1  ;;  %v1536_v1 = vmov (!%p305_p10), 0.0   ;;  %vm1537_vm1 = vmmov (!%p305_p10), 0   ;;  %v454_v7 = vlaneseq (!%p305_p10) }
   0xf   : > { %308 = sbr.rel (%p305_p10) target bundleno = 954 (0x3ba), region = 56  ;;  %1302 = vmatprep.subr.mxu0 (!%p305_p10), %v1536_v1  ;;  %1304 = vmatprep.mubr.msk.f32.mxu0 (!%p305_p10), %vm1537_vm1, %v1536_v1  ;;  %vm359_vm2 = vcmask (!%p305_p10), 31744   ;;  %v471_v5 = vld [vmem:[%s1815_s3] sm:$0xff] (!%p305_p10)  ;;  %v472_v6 = vld [vmem:[%s1815_s3 + $0x8] sm:$0xff] (!%p305_p10)  ;;  %vm484_vm4 = vcmask (!%p305_p10), 64512   ;;  %vm478_vm5 = vcmask (!%p305_p10), 1046528  }
  0x10   : > { %1303 = vmatpush3.msk.msra.mxu0 (!%p305_p10), %vm369_vm0, %v351_v0  ;;  %1390 = vmatprep.subr.mxu1 (!%p305_p10), %v1536_v1  ;;  %v1677_v8 = vshrl.u32 (!%p305_p10), %v454_v7, 7  ;;  %v1239_v9 = vld [vmem:[%s1814_s2] ss:$0 sm:$0xff] (!%p305_p10)  ;;  %vm657_vm6 = vcmask (!%p305_p10), 1045504   ;;  %v473_v26 = vld [vmem:[%s1815_s3 + $0x10] sm:$0xff] (!%p305_p10)  ;;  %v781_v32 = vld [vmem:[%s1817_s5 + $0x18] sm:$0xff] (!%p305_p10) }
  0x11   : > { %1391 = vmatpush3.msk.msra.mxu1 (!%p305_p10), %vm369_vm0, %v351_v0  ;;  %1310 = vmatprep.mubr.msk.f32.mxu1 (!%p305_p10), %vm1537_vm1, %v1536_v1  ;;  %v780_v31 = vld [vmem:[%s1817_s5 + $0x10] sm:$0xff] (!%p305_p10)  ;;  %v778_v34 = vld [vmem:[%s1817_s5] sm:$0xff] (!%p305_p10)  ;;  %v779_v35 = vld [vmem:[%s1817_s5 + $0x8] sm:$0xff] (!%p305_p10)  ;;  %vm793_vm8 = vcmask (!%p305_p10), 130048   ;;  %s1269_s16 = sshll.u32 (!%p305_p10), %s1526_s12, 8  ;;  %vm1138_vm9 = vcmask (!%p305_p10), 261120  }
  0x12   : > { %1324 = vmatprep.subr.mxu0 (!%p305_p10), %v1536_v1  ;;  %1313 = vmatprep.subr.mxu1 (!%p305_p10), %v1536_v1  ;;  %vm459_vm3 = vcmp.ge.s32.totalorder (!%p305_p10), %v1677_v8, 6  ;;  %v1374_v33 = vpack.c.bf16 (!%p305_p10), %v781_v32, %v780_v31  ;;  %v1378_v36 = vpack.c.bf16 (!%p305_p10), %v779_v35, %v778_v34  ;;  %v1048_v37 = vld [vmem:[%s1819_s7] sm:$0xff] (!%p305_p10)  ;;  %v1049_v38 = vld [vmem:[%s1819_s7 + $0x8] sm:$0xff] (!%p305_p10)  ;;  %vm766_vm7 = vcmp.ge.s32.totalorder (!%p305_p10), %v1677_v8, 4  ;;  %s1764_s23 = scalar_lea.hbm (!%p305_p10), %s1821_s9, %s1269_s16 }
  0x13   : > { %v1386_v39 = vpack.c.bf16 (!%p305_p10), %v1049_v38, %v1048_v37  ;;  %v1253_v55 = vld [vmem:[%s1816_s4] ss:$0 sm:$0xff] (!%p305_p10) }
  0x14   : > { %v782_v8 = vld [vmem:[%s1817_s5 + $0x20] sm:$0xff] (!%p305_p10) }
  0x16   : > { %s341_s25 = scalar_select %p340_p11, %s1526_s12, 1 }
  0x18   : > { %s1396_s26 = smul.u32 24, %s341_s25  ;;  %s337_s25 = sand.u32 1, %s1518_s10  }
  0x19   : > { %s1766_s24 = scalar_lea.sflag [#allocation3], %s337_s25 }
  0x1a   : > { %s344_s29 = scalar_lea.vmem %s1812_s0, %s1396_s26  ;;  %s1237_s26 = sshll.u32 %s337_s25, 4 }
  0x1b   : > { %v348_v2 = vld [vmem:[%s344_s29] sm:$0xff]  ;;  %v350_v3 = vld [vmem:[%s344_s29 + $0x10] sm:$0x3f]  ;;  %v349_v4 = vld [vmem:[%s344_s29 + $0x8] sm:$0xff]  ;;  %s339_s29 = scalar_lea.vmem [#allocation2], %s1237_s26  ;;  %s1538_s26 = smov [#allocation2]  }
  0x1c   : > { %1305 = vmatmul.mubr.msk.f32.vlgmr.msra.gmra.mrb[0].mxu0 %vm359_vm2, %v348_v2  ;;  %1311 = vmatmul.mubr.msk.f32.vlgmr.msra.gmra.mrb[0].mxu1 %vm359_vm2, %v350_v3  ;;  %s1157_s15 = sshll.u32 %s339_s29, 4  ;;  %s1460_s27 = sshll.u32 %s1538_s26, 4  ;;  %s1759_s15 = int_to_ptr.vmem [resolvable:$true] %s1157_s15  ;;  %s1461_s27 = int_to_ptr.vmem [resolvable:$false] %s1460_s27 }
  0x1d   : > { %1307 = vmatprep.mubr.msk.f32.mxu0 %vm1537_vm1, %v1536_v1  ;;  %1315 = vmatprep.mubr.msk.f32.mxu1 %vm1537_vm1, %v1536_v1  ;;  %s1456_s12 = scalar_lea.vmem %s1759_s15, 256  ;;  %s1462_s28 = scalar_lea.vmem %s1461_s27, 512 }
  0x1e   : > { %1325 = vmatpush3.msra.mxu0 %v471_v5  ;;  %1314 = vmatpush3.msra.mxu1 %v472_v6  ;;  %p1457_p12 = scmp.ne.s32.totalorder %s1759_s15, %s1456_s12  ;;  %p1463_p1 = scmp.lt.s32.totalorder %s1759_s15, %s1461_s27 }
  0x1f   : > { %1335 = vmatprep.subr.mxu1 %v1536_v1  ;;  %1375 = vmatprep.subr.bf16.mxu0 %v1374_v33  ;;  %p1464_p2 = scmp.lt.s32.totalorder %s1462_s28, %s1456_s12 }
  0x20   : > { %1308 = vmatmul.mubr.msk.f32.gmra.mrb[2].mxu0 %vm359_vm2, %v349_v4  ;;  %p1458_p13 = pnand %p1457_p12, %p1631_p4 }
  0x21   : > { %1326 = vmatprep.mubr.msk.f32.mxu0 %vm1537_vm1, %v1536_v1  ;;  %p1465_p3 = por %p1464_p2, %p1463_p1 }
  0x22   : > { %p1459_p0 = pneg %p1458_p13 }
  0x24   : > { %p1466_p5 = pnand %p1465_p3, %p1459_p0 }
  0xef   : > { %v439_v10 = vpop.f32.mrb[0].mxu0  ;;  %v449_v11 = vpop.f32.mrb[0].mxu1 }
  0xf0   : > { %v440_v12 = vadd.f32 %v1239_v9, %v439_v10  ;;  %v1306_v13 = vpop.f32.mrb[1].mxu0  ;;  %v450_v14 = vadd.f32 %v1239_v9, %v449_v11  ;;  %v1312_v15 = vpop.f32.mrb[1].mxu1 }
  0xf2   : > { %v468_v16 = vsel %vm459_vm3, %v440_v12, 0.0  ;;  %v482_v19 = vrot.slane %v450_v14, 1  ;;  %v661_v20 = vrot.slane %v450_v14, 2 }
  0xf3   : > { %v444_v17 = vpop.f32.mrb[2].mxu0  ;;  %1327 = vmatmul.mubr.msk.f32.vlgmr.msra.gmra.mrb[4].mxu0 %vm484_vm4, %v468_v16  ;;  %v479_v22 = vrot.slane %v468_v16, 1  ;;  %v658_v23 = vrot.slane %v468_v16, 2 }
  0xf4   : > { %v445_v18 = vadd.f32 %v1239_v9, %v444_v17  ;;  %v1309_v21 = vpop.f32.mrb[3].mxu0  ;;  %1329 = vmatprep.mubr.msk.f32.mxu0 %vm1537_vm1, %v1536_v1  ;;  %1377 = vmatpush3.bf16.msra.mxu0 %v1374_v33 }
  0xf5   : > { %1379 = vmatprep.subr.bf16.mxu0 %v1378_v36  ;;  %v1260_v21 = vld [vmem:[%s1818_s6] ss:$0 sm:$0xff] }
  0xf6   : > { %v480_v24 = vrot.slane %v445_v18, 1  ;;  %v659_v25 = vrot.slane %v445_v18, 2 }
  0xf7   : > { %1330 = vmatmul.mubr.msk.f32.gmra.mrb[6].mxu0 %vm484_vm4, %v445_v18 }
  0xf8   : > { %v481_v27 = vsel %vm478_vm5, %v479_v22, %v480_v24  ;;  %1332 = vmatprep.mubr.msk.f32.mxu0 %vm1537_vm1, %v1536_v1  ;;  %v483_v28 = vsel %vm478_vm5, %v480_v24, %v482_v19  ;;  %v660_v29 = vsel %vm657_vm6, %v658_v23, %v659_v25  ;;  %v662_v30 = vsel %vm657_vm6, %v659_v25, %v661_v20 }
  0xf9   : > { %1316 = vmatmul.mubr.msk.f32.vlgmr.msra.gmra.mrb[2].mxu1 %vm484_vm4, %v481_v27 }
  0xfa   : > { %1336 = vmatpush3.msra.mxu1 %v473_v26  ;;  %1318 = vmatprep.mubr.msk.f32.mxu1 %vm1537_vm1, %v1536_v1 }
  0xfb   : > { %1333 = vmatmul.mubr.msk.f32.gmra.mrb[8].mxu0 %vm484_vm4, %v450_v14  ;;  %1387 = vmatprep.subr.bf16.mxu1 %v1386_v39  ;;  %v783_v14 = vld [vmem:[%s1817_s5 + $0x28] sm:$0xff] }
  0xfc   : > { %v1382_v18 = vpack.c.bf16 %v783_v14, %v782_v8 }
  0xfd   : > { %1319 = vmatmul.mubr.msk.f32.gmra.mrb[4].mxu1 %vm484_vm4, %v483_v28  ;;  %v1261_v28 = vld [vmem:[%s1820_s8] ss:$0 sm:$0xff] }
  0xfe   : > { %1321 = vmatprep.mubr.msk.f32.mxu1 %vm1537_vm1, %v1536_v1 }
 0x101   : > { %1322 = vmatmul.mubr.msk.f32.gmra.mrb[6].mxu1 %vm484_vm4, %v482_v19 }
 0x102   : > { %1337 = vmatprep.mubr.msk.f32.mxu1 %vm1537_vm1, %v1536_v1 }
 0x105   : > { %1338 = vmatmul.mubr.msk.f32.vlgmr.msra.gmra.mrb[8].mxu1 %vm484_vm4, %v660_v29 }
 0x106   : > { %1340 = vmatprep.mubr.msk.f32.mxu1 %vm1537_vm1, %v1536_v1  ;;  %1389 = vmatpush3.bf16.msra.mxu1 %v1386_v39 }
 0x109   : > { %1341 = vmatmul.mubr.msk.f32.gmra.mrb[10].mxu1 %vm484_vm4, %v662_v30 }
 0x10a   : > { %1343 = vmatprep.mubr.msk.f32.mxu1 %vm1537_vm1, %v1536_v1 }
 0x10d   : > { %1344 = vmatmul.mubr.msk.f32.gmra.mrb[12].mxu1 %vm484_vm4, %v661_v20 }
 0x1c6   : > { %v643_v40 = vpop.f32.mrb[4].mxu0 }
 0x1c7   : > { %v1328_v41 = vpop.f32.mrb[5].mxu0 }
 0x1ca   : > { %v648_v42 = vpop.f32.mrb[6].mxu0 }
 0x1cb   : > { %v1331_v43 = vpop.f32.mrb[7].mxu0 }
 0x1cc   : > { %v557_v44 = vpop.f32.mrb[2].mxu1 }
 0x1cd   : > { %v644_v45 = vadd.f32 %v643_v40, %v557_v44  ;;  %v1317_v46 = vpop.f32.mrb[3].mxu1 }
 0x1ce   : > { %v653_v47 = vpop.f32.mrb[8].mxu0 }
 0x1cf   : > { %v1334_v48 = vpop.f32.mrb[9].mxu0 }
 0x1d0   : > { %v562_v49 = vpop.f32.mrb[4].mxu1 }
 0x1d1   : > { %v649_v50 = vadd.f32 %v648_v42, %v562_v49  ;;  %v1320_v51 = vpop.f32.mrb[5].mxu1 }
 0x1d4   : > { %v567_v52 = vpop.f32.mrb[6].mxu1 }
 0x1d5   : > { %v654_v53 = vadd.f32 %v653_v47, %v567_v52  ;;  %v1323_v54 = vpop.f32.mrb[7].mxu1 }
 0x1d8   : > { %v735_v56 = vpop.f32.mrb[8].mxu1 }
 0x1d9   : > { %v749_v57 = vadd.f32 %v735_v56, %v644_v45  ;;  %v1339_v58 = vpop.f32.mrb[9].mxu1 }
 0x1db   : > { %v758_v59 = vadd.f32 %v1253_v55, %v749_v57 }
 0x1dc   : > { %v740_v60 = vpop.f32.mrb[10].mxu1 }
 0x1dd   : > { %v761_v61 = vmax.f32 %v758_v59, 0.0  ;;  %v750_v62 = vadd.f32 %v740_v60, %v649_v50  ;;  %v1342_v63 = vpop.f32.mrb[11].mxu1 }
 0x1df   : > { %v775_v0 = vsel %vm766_vm7, %v761_v61, 0.0  ;;  %v759_v1 = vadd.f32 %v1253_v55, %v750_v62 }
 0x1e0   : > { %v745_v2 = vpop.f32.mrb[12].mxu1  ;;  %v788_v6 = vrot.slane %v775_v0, 2  ;;  %v952_v7 = vrot.slane %v775_v0, 4 }
 0x1e1   : > { %v762_v3 = vmax.f32 %v759_v1, 0.0  ;;  %v751_v4 = vadd.f32 %v745_v2, %v654_v53  ;;  %v1345_v5 = vpop.f32.mrb[13].mxu1 }
 0x1e3   : > { %v789_v9 = vrot.slane %v762_v3, 2  ;;  %v953_v10 = vrot.slane %v762_v3, 4  ;;  %v760_v11 = vadd.f32 %v1253_v55, %v751_v4 }
 0x1e5   : > { %v763_v12 = vmax.f32 %v760_v11, 0.0  ;;  %v790_v13 = vsel %vm657_vm6, %v788_v6, %v789_v9  ;;  %v954_v15 = vsel %vm369_vm0, %v952_v7, %v953_v10 }
 0x1e6   : > { %1350 = vmatprep.mubr.msk.f32.mxu0 %vm793_vm8, %v790_v13 }
 0x1e7   : > { %v791_v16 = vrot.slane %v763_v12, 2  ;;  %v955_v17 = vrot.slane %v763_v12, 4 }
 0x1e9   : > { %v792_v19 = vsel %vm657_vm6, %v789_v9, %v791_v16  ;;  %v956_v20 = vsel %vm369_vm0, %v953_v10, %v955_v17 }
 0x1ea   : > { %1351 = vmatmul.mubr.msk.f32.vlgmr.msra.gmra.mrb[10].mxu0 %vm793_vm8, %v792_v19 }
 0x1eb   : > { %1381 = vmatpush3.bf16.msra.mxu0 %v1378_v36  ;;  %1357 = vmatprep.mubr.msk.f32.mxu0 %vm793_vm8, %v775_v0 }
 0x1ec   : > { %1383 = vmatprep.subr.bf16.mxu0 %v1382_v18 }
 0x1f2   : > { %1358 = vmatmul.mubr.msk.f32.vlgmr.msra.gmra.mrb[10].mxu0 %vm793_vm8, %v762_v3 }
 0x1f3   : > { %1385 = vmatpush3.bf16.msra.mxu0 %v1382_v18  ;;  %1364 = vmatprep.mubr.msk.f32.mxu0 %vm793_vm8, %v954_v15 }
 0x1fa   : > { %1365 = vmatmul.mubr.msk.f32.vlgmr.msra.gmra.mrb[10].mxu0 %vm793_vm8, %v956_v20 }
 0x2cd   : > { %v1366_v22 = vpop.f32.mrb[10].mxu0 }
 0x2ce   : > { %v1045_v23 = vadd.f32 %v1366_v22, %v1260_v21  ;;  %v1027_v24 = vpop.f32.mrb[11].mxu0 }
 0x2cf   : > { %v1044_v25 = vadd.f32 %v1260_v21, %v1027_v24 }
 0x2d0   : > { %v1047_v27 = vmax.f32 %v1045_v23, 0.0 }
 0x2d1   : > { %v1046_v26 = vmax.f32 %v1044_v25, 0.0 }
 0x2d3   : > { %1371 = vmatprep.mubr.msk.f32.mxu1 %vm793_vm8, %v1046_v26 }
 0x2d4   : > { %1372 = vmatmul.mubr.msk.f32.vlgmr.msra.gmra.mrb[14].mxu1 %vm793_vm8, %v1047_v27 }
 0x3a7   : > { %v1373_v29 = vpop.f32.mrb[14].mxu1 }
 0x3a8   : > { %v1135_v30 = vadd.f32 %v1373_v29, %v1261_v28  ;;  %v1129_v31 = vpop.f32.mrb[15].mxu1 }
 0x3a9   : > { %v1130_v32 = vadd.f32 %v1261_v28, %v1129_v31 }
 0x3aa   : > { %1140 = vst.msk [vmem:[%s339_s29 + $0x8] sm:$0xff] %vm1138_vm9, %v1135_v30 }
 0x3ab   : > { %1139 = vst.msk [vmem:[%s339_s29] sm:$0xff] %vm1138_vm9, %v1130_v32 }
 0x3ac   : > { %1469 = shalt.err (!%p1466_p5)
}
 0x3ad   : > { %s1470_s25 = scalar_lea.hbm %s1764_s23, 256  ;;  %s1474_s18 = scalar_lea.hbm %s1821_s9, 512 }
 0x3ae   : > { %p1471_p6 = scmp.ne.s32.totalorder %s1764_s23, %s1470_s25  ;;  %p1475_p10 = scmp.lt.u32.totalorder %s1764_s23, %s1821_s9 }
 0x3af   : > { %p1476_p11 = scmp.lt.u32.totalorder %s1474_s18, %s1470_s25  ;;  %p1478_p13 = scmp.lt.u32.totalorder %s1470_s25, %s1764_s23 }
 0x3b0   : > { %p1472_p7 = pnand %p1471_p6, %p1631_p4 }
 0x3b1   : > { %p1477_p12 = por %p1476_p11, %p1475_p10 }
 0x3b2   : > { %p1473_p9 = pneg %p1472_p7 }
 0x3b3   : > { %p1479_p0 = por %p1478_p13, %p1477_p12 }
 0x3b5   : > { %p1480_p1 = pnand %p1479_p0, %p1473_p9 }
 0x3b7   : > { %1483 = shalt.err (!%p1480_p1)
}
 0x3b8   : > { %s1539_s12 = smov 128   ;;  %s1540_s27 = smov 8  }
 0x3b9   : > { %1397 = dma.vmem_to_hbm [thread:$0]  (%p1631_p4), %s1759_s15, 256, %s1764_s23, %s1766_s24, %s1539_s12, %s1539_s12, %s1540_s27  }
 0x3ba PF: > { %p1403_p2 = scmp.ge.s32.totalorder %s1534_s14, 2  ;;  %s1172_s28 = sand.u32 1, %s1514_s30  }
 0x3bb   : > { %s1173_s25 = scalar_lea.sflag [#allocation3], %s1172_s28 }
 0x3bc   : > { %p1400_p3 = pnand %p1403_p2, %p1638_p8 }
 0x3be   : > { %1509 = dma.done.wait (!%p1400_p3), %s1173_s25, 256  }
 0x3bf   : > { %1511 = vsyncadd (!%p1400_p3), %s1173_s25, 4294967040  ;;  %s22_s14 = sadd.s32 1, %s1534_s14   ;;  %s1824_s30 = smov %s1518_s10 }
 0x3c0   : > { %p19_p5 = scmp.ge.s32.totalorder %s22_s14, 4   ;;  %s1825_s10 = smov %s1522_s11 }
 0x3c1   : > { %s1826_s11 = smov %s1644_s22  ;;  %s1827_s12 = smov %s1530_s13 }
 0x3c2   : > { %s1828_s13 = smov %s1830_s17  ;;  %21 = sbr.rel (!%p19_p5) target bundleno = 4 (0x4), region = 92 }
 0x3c9   :  { %1178 = vsyncpa [#allocation3], 1 }
 0x3ca   :  { %1180 = vsyncpa [#allocation3 + $0x1], 1 }

</bundles_post_ra>
